<compile_context>
chip_gen: v6e
topology: v6e:2x2x1
jax: 0.10.0
libtpu: 0.0.40
codegen_flags: <defaults>
</compile_context>

<pallas_src>
import jax
import jax.numpy as jnp
from jax import lax
from jax.experimental import pallas as pl
from jax.experimental.pallas import tpu as pltpu

EPS = 1e-5
_VMEM_LIMIT = 32 * 1024 * 1024


# ------------------------------ Pallas kernel -------------------------------

def _make_double_conv_kernel(N, Cin, C1, C2, H, W):
    P = H * W
    pow2 = ((P & (P - 1)) == 0) and ((W & (W - 1)) == 0)

    def pixel_coords(shape):
        # Column index -> (h, w) within its H*W plane (period P along lanes).
        q = lax.broadcasted_iota(jnp.int32, shape, len(shape) - 1)
        if pow2:
            p = jnp.bitwise_and(q, P - 1)
            hh = jnp.right_shift(p, W.bit_length() - 1)
            ww = jnp.bitwise_and(p, W - 1)
        else:
            p = q % P
            hh = p // W
            ww = p % W
        return hh, ww

    def taps(a):
        """9 shifted copies of `a`, zero-filled outside each H*W plane.

        `a`: (rows, cols) f32; every row is one (or several, concatenated
        along lanes) row-major H*W plane(s), cols % P == 0.  Shifts are done
        with pltpu.roll (XLU) and an iota mask (VPU) -- no padded scratch, no
        tile-boundary-crossing slices.  Tap order is (kh, kw), matching the
        folded weight layout.
        """
        rows, cols = a.shape
        hh, ww = pixel_coords((rows, cols))
        out = []
        for kh in range(3):
            for kw in range(3):
                dh, dw = kh - 1, kw - 1
                s = dh * W + dw
                t = a if s == 0 else pltpu.roll(a, shift=(-s) % cols, axis=1)
                valid = None
                if dh != 0:
                    valid = (hh >= 1) if dh < 0 else (hh <= H - 2)
                if dw != 0:
                    vw = (ww >= 1) if dw < 0 else (ww <= W - 2)
                    valid = vw if valid is None else jnp.logical_and(valid, vw)
                if valid is not None:
                    t = jnp.where(valid, t, 0.0)
                out.append(t)
        return out

    def bn_relu(y, g_ref, b_ref):
        # y: (C, N*P). Training-mode BatchNorm2d (biased variance over N,H,W),
        # two-pass moments for numerical robustness, then ReLU.
        mean = jnp.mean(y, axis=1, keepdims=True)
        var = jnp.mean((y - mean) * (y - mean), axis=1, keepdims=True)
        scale = g_ref[...] * lax.rsqrt(var + EPS)
        shift = b_ref[...] - mean * scale
        return jnp.maximum(y * scale + shift, 0.0)

    def kernel(x_ref, w1_ref, b1_ref, g1_ref, be1_ref,
               w2_ref, b2_ref, g2_ref, be2_ref, o_ref):
        # ---- stage 1: conv1 over the whole batch as one MXU matmul --------
        x = x_ref[...]                                        # (N*Cin, P)
        t1 = taps(x)                                          # 9 x (N*Cin, P)
        per_img = []
        for n in range(N):
            r0 = n * Cin
            per_img.append(jnp.concatenate(
                [t[r0:r0 + Cin] for t in t1], axis=0))        # (9*Cin, P)
        patches1 = (jnp.concatenate(per_img, axis=1)
                    if N > 1 else per_img[0])                 # (9*Cin, N*P)
        y1 = jnp.dot(w1_ref[...], patches1,
                     preferred_element_type=jnp.float32) + b1_ref[...]
        a1 = bn_relu(y1, g1_ref, be1_ref)                     # (C1, N*P)

        # ---- stage 2: conv2 directly on the (C1, N*P) slab -----------------
        t2 = taps(a1)                                         # 9 x (C1, N*P)
        patches2 = jnp.concatenate(t2, axis=0)                # (9*C1, N*P)
        y2 = jnp.dot(w2_ref[...], patches2,
                     preferred_element_type=jnp.float32) + b2_ref[...]
        out = bn_relu(y2, g2_ref, be2_ref)                    # (C2, N*P)

        # ---- store in NCHW layout (128-aligned, lane-dense column slices) --
        for n in range(N):
            o_ref[n] = out[:, n * P:(n + 1) * P]

    return kernel


# ------------------------------ Pallas wrapper ------------------------------

def _double_conv_pallas(x_nchw, params):
    N, Cin, H, W = x_nchw.shape
    C1 = params["w1"].shape[0]
    C2 = params["w2"].shape[0]
    P = H * W

    # Free trailing-dim merges / tiny weight reshapes (no activation transpose).
    x2d = x_nchw.reshape(N * Cin, P)
    w1_2d = jnp.transpose(params["w1"], (0, 2, 3, 1)).reshape(C1, 9 * Cin)
    w2_2d = jnp.transpose(params["w2"], (0, 2, 3, 1)).reshape(C2, 9 * C1)
    col = lambda v: v.reshape(-1, 1)

    flops = 2 * N * P * 9 * (Cin * C1 + C1 * C2) + 12 * N * P * (C1 + C2)
    bytes_accessed = 4 * (N * Cin * P + 9 * Cin * C1 + 9 * C1 * C2
                          + 3 * (C1 + C2) + N * C2 * P)

    kern = _make_double_conv_kernel(N, Cin, C1, C2, H, W)
    out = pl.pallas_call(
        kern,
        out_shape=jax.ShapeDtypeStruct((N, C2, P), jnp.float32),
        grid=(1,),
        in_specs=[
            pl.BlockSpec((N * Cin, P), lambda i: (0, 0)),
            pl.BlockSpec((C1, 9 * Cin), lambda i: (0, 0)),
            pl.BlockSpec((C1, 1), lambda i: (0, 0)),
            pl.BlockSpec((C1, 1), lambda i: (0, 0)),
            pl.BlockSpec((C1, 1), lambda i: (0, 0)),
            pl.BlockSpec((C2, 9 * C1), lambda i: (0, 0)),
            pl.BlockSpec((C2, 1), lambda i: (0, 0)),
            pl.BlockSpec((C2, 1), lambda i: (0, 0)),
            pl.BlockSpec((C2, 1), lambda i: (0, 0)),
        ],
        out_specs=pl.BlockSpec((N, C2, P), lambda i: (0, 0, 0)),
        compiler_params=pltpu.CompilerParams(
            dimension_semantics=("arbitrary",),
            vmem_limit_bytes=_VMEM_LIMIT),
        cost_estimate=pl.CostEstimate(
            flops=flops, transcendentals=C1 + C2,
            bytes_accessed=bytes_accessed),
    )(x2d, w1_2d,
      col(params["b1"]), col(params["gamma1"]), col(params["beta1"]),
      w2_2d,
      col(params["b2"]), col(params["gamma2"]), col(params["beta2"]))

    return out.reshape(N, C2, H, W)                      # free trailing reshape


double_conv_forward = jax.jit(_double_conv_pallas)


# ---------------------------- pure-JAX reference -----------------------------

def _ref_forward(x_nchw, params):
    def conv(x, w_oihw, b):
        y = lax.conv_general_dilated(
            x, w_oihw, window_strides=(1, 1), padding=((1, 1), (1, 1)),
            dimension_numbers=("NCHW", "OIHW", "NCHW"))
        return y + b.reshape(1, -1, 1, 1)

    def bn_relu(y, gamma, beta):
        m = jnp.mean(y, axis=(0, 2, 3), keepdims=True)
        v = jnp.mean((y - m) ** 2, axis=(0, 2, 3), keepdims=True)
        yhat = (y - m) / jnp.sqrt(v + EPS)
        return jnp.maximum(yhat * gamma.reshape(1, -1, 1, 1)
                           + beta.reshape(1, -1, 1, 1), 0.0)

    y1 = bn_relu(conv(x_nchw, params["w1"], params["b1"]),
                 params["gamma1"], params["beta1"])
    y2 = bn_relu(conv(y1, params["w2"], params["b2"]),
                 params["gamma2"], params["beta2"])
    return y2


# ---------------------------------- main ------------------------------------

if __name__ == "__main__":
    N, in_ch, out_ch, H, W = 2, 4, 8, 16, 16

    key = jax.random.PRNGKey(0)
    k_x, k_w1, k_b1, k_w2, k_b2 = jax.random.split(key, 5)

    x = jax.random.normal(k_x, (N, in_ch, H, W), jnp.float32)
    params = {
        # PyTorch-native OIHW conv weights; BN params at PyTorch defaults.
        "w1": 0.1 * jax.random.normal(k_w1, (out_ch, in_ch, 3, 3), jnp.float32),
        "b1": 0.1 * jax.random.normal(k_b1, (out_ch,), jnp.float32),
        "gamma1": jnp.ones((out_ch,), jnp.float32),
        "beta1": jnp.zeros((out_ch,), jnp.float32),
        "w2": 0.1 * jax.random.normal(k_w2, (out_ch, out_ch, 3, 3), jnp.float32),
        "b2": 0.1 * jax.random.normal(k_b2, (out_ch,), jnp.float32),
        "gamma2": jnp.ones((out_ch,), jnp.float32),
        "beta2": jnp.zeros((out_ch,), jnp.float32),
    }

    out = double_conv_forward(x, params)
    out = jax.block_until_ready(out)

    ref = _ref_forward(x, params)
    assert out.shape == (N, out_ch, H, W)
    assert jnp.allclose(out, ref, atol=1e-4, rtol=1e-4), "mismatch vs JAX reference"

    print("KERNEL_OK")
</pallas_src>

<mosaic_0001>
module attributes {stable_mosaic.version = 11 : i64} {
  func.func @kernel(%arg0: i32, %arg1: memref<8x256xf32, #tpu.memory_space<vmem>>, %arg2: memref<8x36xf32, #tpu.memory_space<vmem>>, %arg3: memref<8x1xf32, #tpu.memory_space<vmem>>, %arg4: memref<8x1xf32, #tpu.memory_space<vmem>>, %arg5: memref<8x1xf32, #tpu.memory_space<vmem>>, %arg6: memref<8x72xf32, #tpu.memory_space<vmem>>, %arg7: memref<8x1xf32, #tpu.memory_space<vmem>>, %arg8: memref<8x1xf32, #tpu.memory_space<vmem>>, %arg9: memref<8x1xf32, #tpu.memory_space<vmem>>, %arg10: memref<2x8x256xf32, #tpu.memory_space<vmem>>) attributes {dimension_semantics = [#tpu.dimension_semantics<arbitrary>], iteration_bounds = array<i64: 1>, scalar_prefetch = 0 : i64, scratch_operands = 0 : i64, tpu.core_type = #tpu.core_type<tc>, window_params = [{pipeline_mode = #tpu.pipeline_mode<synchronous>, transform_indices = @transform_0, window_bounds = array<i64: 8, 256>}, {pipeline_mode = #tpu.pipeline_mode<synchronous>, transform_indices = @transform_1, window_bounds = array<i64: 8, 36>}, {pipeline_mode = #tpu.pipeline_mode<synchronous>, transform_indices = @transform_2, window_bounds = array<i64: 8, 1>}, {pipeline_mode = #tpu.pipeline_mode<synchronous>, transform_indices = @transform_3, window_bounds = array<i64: 8, 1>}, {pipeline_mode = #tpu.pipeline_mode<synchronous>, transform_indices = @transform_4, window_bounds = array<i64: 8, 1>}, {pipeline_mode = #tpu.pipeline_mode<synchronous>, transform_indices = @transform_5, window_bounds = array<i64: 8, 72>}, {pipeline_mode = #tpu.pipeline_mode<synchronous>, transform_indices = @transform_6, window_bounds = array<i64: 8, 1>}, {pipeline_mode = #tpu.pipeline_mode<synchronous>, transform_indices = @transform_7, window_bounds = array<i64: 8, 1>}, {pipeline_mode = #tpu.pipeline_mode<synchronous>, transform_indices = @transform_8, window_bounds = array<i64: 8, 1>}, {pipeline_mode = #tpu.pipeline_mode<synchronous>, transform_indices = @transform_9, window_bounds = array<i64: 2, 8, 256>}]} {
    %c0 = arith.constant 0 : index
    %c0_0 = arith.constant 0 : index
    %0 = vector.load %arg1[%c0, %c0_0] : memref<8x256xf32, #tpu.memory_space<vmem>>, vector<8x256xf32>
    %1 = tpu.iota {dimensions = array<i32: 1>} : vector<8x256xi32>
    %c255_i32 = arith.constant 255 : i32
    %2 = vector.broadcast %c255_i32 : i32 to vector<8x256xi32>
    %3 = arith.andi %1, %2 : vector<8x256xi32>
    %c4_i32 = arith.constant 4 : i32
    %4 = vector.broadcast %c4_i32 : i32 to vector<8x256xi32>
    %5 = arith.shrsi %3, %4 : vector<8x256xi32>
    %c15_i32 = arith.constant 15 : i32
    %6 = vector.broadcast %c15_i32 : i32 to vector<8x256xi32>
    %7 = arith.andi %3, %6 : vector<8x256xi32>
    %c17_i32 = arith.constant 17 : i32
    %8 = tpu.dynamic_rotate %0 by %c17_i32 dim 1 : vector<8x256xf32>, i32 -> vector<8x256xf32>
    %c1_i32 = arith.constant 1 : i32
    %9 = vector.broadcast %c1_i32 : i32 to vector<8x256xi32>
    %10 = arith.cmpi sge, %5, %9 : vector<8x256xi32>
    %c1_i32_1 = arith.constant 1 : i32
    %11 = vector.broadcast %c1_i32_1 : i32 to vector<8x256xi32>
    %12 = arith.cmpi sge, %7, %11 : vector<8x256xi32>
    %13 = arith.andi %10, %12 : vector<8x256xi1>
    %cst = arith.constant 0.000000e+00 : f32
    %14 = vector.broadcast %cst : f32 to vector<8x256xf32>
    %15 = arith.select %13, %8, %14 : vector<8x256xi1>, vector<8x256xf32>
    %c16_i32 = arith.constant 16 : i32
    %16 = tpu.dynamic_rotate %0 by %c16_i32 dim 1 : vector<8x256xf32>, i32 -> vector<8x256xf32>
    %c1_i32_2 = arith.constant 1 : i32
    %17 = vector.broadcast %c1_i32_2 : i32 to vector<8x256xi32>
    %18 = arith.cmpi sge, %5, %17 : vector<8x256xi32>
    %cst_3 = arith.constant 0.000000e+00 : f32
    %19 = vector.broadcast %cst_3 : f32 to vector<8x256xf32>
    %20 = arith.select %18, %16, %19 : vector<8x256xi1>, vector<8x256xf32>
    %c15_i32_4 = arith.constant 15 : i32
    %21 = tpu.dynamic_rotate %0 by %c15_i32_4 dim 1 : vector<8x256xf32>, i32 -> vector<8x256xf32>
    %c1_i32_5 = arith.constant 1 : i32
    %22 = vector.broadcast %c1_i32_5 : i32 to vector<8x256xi32>
    %23 = arith.cmpi sge, %5, %22 : vector<8x256xi32>
    %c14_i32 = arith.constant 14 : i32
    %24 = vector.broadcast %c14_i32 : i32 to vector<8x256xi32>
    %25 = arith.cmpi sle, %7, %24 : vector<8x256xi32>
    %26 = arith.andi %23, %25 : vector<8x256xi1>
    %cst_6 = arith.constant 0.000000e+00 : f32
    %27 = vector.broadcast %cst_6 : f32 to vector<8x256xf32>
    %28 = arith.select %26, %21, %27 : vector<8x256xi1>, vector<8x256xf32>
    %c1_i32_7 = arith.constant 1 : i32
    %29 = tpu.dynamic_rotate %0 by %c1_i32_7 dim 1 : vector<8x256xf32>, i32 -> vector<8x256xf32>
    %c1_i32_8 = arith.constant 1 : i32
    %30 = vector.broadcast %c1_i32_8 : i32 to vector<8x256xi32>
    %31 = arith.cmpi sge, %7, %30 : vector<8x256xi32>
    %cst_9 = arith.constant 0.000000e+00 : f32
    %32 = vector.broadcast %cst_9 : f32 to vector<8x256xf32>
    %33 = arith.select %31, %29, %32 : vector<8x256xi1>, vector<8x256xf32>
    %c255_i32_10 = arith.constant 255 : i32
    %34 = tpu.dynamic_rotate %0 by %c255_i32_10 dim 1 : vector<8x256xf32>, i32 -> vector<8x256xf32>
    %c14_i32_11 = arith.constant 14 : i32
    %35 = vector.broadcast %c14_i32_11 : i32 to vector<8x256xi32>
    %36 = arith.cmpi sle, %7, %35 : vector<8x256xi32>
    %cst_12 = arith.constant 0.000000e+00 : f32
    %37 = vector.broadcast %cst_12 : f32 to vector<8x256xf32>
    %38 = arith.select %36, %34, %37 : vector<8x256xi1>, vector<8x256xf32>
    %c241_i32 = arith.constant 241 : i32
    %39 = tpu.dynamic_rotate %0 by %c241_i32 dim 1 : vector<8x256xf32>, i32 -> vector<8x256xf32>
    %c14_i32_13 = arith.constant 14 : i32
    %40 = vector.broadcast %c14_i32_13 : i32 to vector<8x256xi32>
    %41 = arith.cmpi sle, %5, %40 : vector<8x256xi32>
    %c1_i32_14 = arith.constant 1 : i32
    %42 = vector.broadcast %c1_i32_14 : i32 to vector<8x256xi32>
    %43 = arith.cmpi sge, %7, %42 : vector<8x256xi32>
    %44 = arith.andi %41, %43 : vector<8x256xi1>
    %cst_15 = arith.constant 0.000000e+00 : f32
    %45 = vector.broadcast %cst_15 : f32 to vector<8x256xf32>
    %46 = arith.select %44, %39, %45 : vector<8x256xi1>, vector<8x256xf32>
    %c240_i32 = arith.constant 240 : i32
    %47 = tpu.dynamic_rotate %0 by %c240_i32 dim 1 : vector<8x256xf32>, i32 -> vector<8x256xf32>
    %c14_i32_16 = arith.constant 14 : i32
    %48 = vector.broadcast %c14_i32_16 : i32 to vector<8x256xi32>
    %49 = arith.cmpi sle, %5, %48 : vector<8x256xi32>
    %cst_17 = arith.constant 0.000000e+00 : f32
    %50 = vector.broadcast %cst_17 : f32 to vector<8x256xf32>
    %51 = arith.select %49, %47, %50 : vector<8x256xi1>, vector<8x256xf32>
    %c239_i32 = arith.constant 239 : i32
    %52 = tpu.dynamic_rotate %0 by %c239_i32 dim 1 : vector<8x256xf32>, i32 -> vector<8x256xf32>
    %c14_i32_18 = arith.constant 14 : i32
    %53 = vector.broadcast %c14_i32_18 : i32 to vector<8x256xi32>
    %54 = arith.cmpi sle, %5, %53 : vector<8x256xi32>
    %c14_i32_19 = arith.constant 14 : i32
    %55 = vector.broadcast %c14_i32_19 : i32 to vector<8x256xi32>
    %56 = arith.cmpi sle, %7, %55 : vector<8x256xi32>
    %57 = arith.andi %54, %56 : vector<8x256xi1>
    %cst_20 = arith.constant 0.000000e+00 : f32
    %58 = vector.broadcast %cst_20 : f32 to vector<8x256xf32>
    %59 = arith.select %57, %52, %58 : vector<8x256xi1>, vector<8x256xf32>
    %60 = vector.extract_strided_slice %15 {offsets = [0, 0], sizes = [4, 256], strides = [1, 1]} : vector<8x256xf32> to vector<4x256xf32>
    %61 = vector.extract_strided_slice %20 {offsets = [0, 0], sizes = [4, 256], strides = [1, 1]} : vector<8x256xf32> to vector<4x256xf32>
    %62 = vector.extract_strided_slice %28 {offsets = [0, 0], sizes = [4, 256], strides = [1, 1]} : vector<8x256xf32> to vector<4x256xf32>
    %63 = vector.extract_strided_slice %33 {offsets = [0, 0], sizes = [4, 256], strides = [1, 1]} : vector<8x256xf32> to vector<4x256xf32>
    %64 = vector.extract_strided_slice %0 {offsets = [0, 0], sizes = [4, 256], strides = [1, 1]} : vector<8x256xf32> to vector<4x256xf32>
    %65 = vector.extract_strided_slice %38 {offsets = [0, 0], sizes = [4, 256], strides = [1, 1]} : vector<8x256xf32> to vector<4x256xf32>
    %66 = vector.extract_strided_slice %46 {offsets = [0, 0], sizes = [4, 256], strides = [1, 1]} : vector<8x256xf32> to vector<4x256xf32>
    %67 = vector.extract_strided_slice %51 {offsets = [0, 0], sizes = [4, 256], strides = [1, 1]} : vector<8x256xf32> to vector<4x256xf32>
    %68 = vector.extract_strided_slice %59 {offsets = [0, 0], sizes = [4, 256], strides = [1, 1]} : vector<8x256xf32> to vector<4x256xf32>
    %69 = tpu.concatenate %60, %61, %62, %63, %64, %65, %66, %67, %68 in 0 : vector<4x256xf32>, vector<4x256xf32>, vector<4x256xf32>, vector<4x256xf32>, vector<4x256xf32>, vector<4x256xf32>, vector<4x256xf32>, vector<4x256xf32>, vector<4x256xf32> -> vector<36x256xf32>
    %70 = vector.extract_strided_slice %15 {offsets = [4, 0], sizes = [4, 256], strides = [1, 1]} : vector<8x256xf32> to vector<4x256xf32>
    %71 = vector.extract_strided_slice %20 {offsets = [4, 0], sizes = [4, 256], strides = [1, 1]} : vector<8x256xf32> to vector<4x256xf32>
    %72 = vector.extract_strided_slice %28 {offsets = [4, 0], sizes = [4, 256], strides = [1, 1]} : vector<8x256xf32> to vector<4x256xf32>
    %73 = vector.extract_strided_slice %33 {offsets = [4, 0], sizes = [4, 256], strides = [1, 1]} : vector<8x256xf32> to vector<4x256xf32>
    %74 = vector.extract_strided_slice %0 {offsets = [4, 0], sizes = [4, 256], strides = [1, 1]} : vector<8x256xf32> to vector<4x256xf32>
    %75 = vector.extract_strided_slice %38 {offsets = [4, 0], sizes = [4, 256], strides = [1, 1]} : vector<8x256xf32> to vector<4x256xf32>
    %76 = vector.extract_strided_slice %46 {offsets = [4, 0], sizes = [4, 256], strides = [1, 1]} : vector<8x256xf32> to vector<4x256xf32>
    %77 = vector.extract_strided_slice %51 {offsets = [4, 0], sizes = [4, 256], strides = [1, 1]} : vector<8x256xf32> to vector<4x256xf32>
    %78 = vector.extract_strided_slice %59 {offsets = [4, 0], sizes = [4, 256], strides = [1, 1]} : vector<8x256xf32> to vector<4x256xf32>
    %79 = tpu.concatenate %70, %71, %72, %73, %74, %75, %76, %77, %78 in 0 : vector<4x256xf32>, vector<4x256xf32>, vector<4x256xf32>, vector<4x256xf32>, vector<4x256xf32>, vector<4x256xf32>, vector<4x256xf32>, vector<4x256xf32>, vector<4x256xf32> -> vector<36x256xf32>
    %80 = tpu.concatenate %69, %79 in 1 : vector<36x256xf32>, vector<36x256xf32> -> vector<36x512xf32>
    %c0_21 = arith.constant 0 : index
    %c0_22 = arith.constant 0 : index
    %81 = vector.load %arg2[%c0_21, %c0_22] : memref<8x36xf32, #tpu.memory_space<vmem>>, vector<8x36xf32>
    %cst_23 = arith.constant dense<0.000000e+00> : vector<8x512xf32>
    %82 = tpu.matmul %81, %80, %cst_23 {dimension_numbers = #tpu.dot_dimension_numbers<[1], [0], [0], [1], [0, 0, 1, 1], [], []>} : vector<8x36xf32>, vector<36x512xf32>, vector<8x512xf32> -> vector<8x512xf32>
    %c0_24 = arith.constant 0 : index
    %c0_25 = arith.constant 0 : index
    %83 = vector.load %arg3[%c0_24, %c0_25] : memref<8x1xf32, #tpu.memory_space<vmem>>, vector<8x1xf32>
    %84 = vector.broadcast %83 : vector<8x1xf32> to vector<8x512xf32>
    %85 = arith.addf %82, %84 : vector<8x512xf32>
    %cst_26 = arith.constant dense<0.000000e+00> : vector<8xf32>
    %86 = vector.multi_reduction <add>, %85, %cst_26 [1] : vector<8x512xf32> to vector<8xf32>
    %87 = vector.shape_cast %86 : vector<8xf32> to vector<8x1xf32>
    %cst_27 = arith.constant 5.120000e+02 : f32
    %88 = vector.broadcast %cst_27 : f32 to vector<8x1xf32>
    %89 = arith.divf %87, %88 : vector<8x1xf32>
    %90 = vector.broadcast %89 : vector<8x1xf32> to vector<8x512xf32>
    %91 = arith.subf %85, %90 : vector<8x512xf32>
    %92 = vector.broadcast %89 : vector<8x1xf32> to vector<8x512xf32>
    %93 = arith.subf %85, %92 : vector<8x512xf32>
    %94 = arith.mulf %91, %93 : vector<8x512xf32>
    %cst_28 = arith.constant dense<0.000000e+00> : vector<8xf32>
    %95 = vector.multi_reduction <add>, %94, %cst_28 [1] : vector<8x512xf32> to vector<8xf32>
    %96 = vector.shape_cast %95 : vector<8xf32> to vector<8x1xf32>
    %cst_29 = arith.constant 5.120000e+02 : f32
    %97 = vector.broadcast %cst_29 : f32 to vector<8x1xf32>
    %98 = arith.divf %96, %97 : vector<8x1xf32>
    %c0_30 = arith.constant 0 : index
    %c0_31 = arith.constant 0 : index
    %99 = vector.load %arg4[%c0_30, %c0_31] : memref<8x1xf32, #tpu.memory_space<vmem>>, vector<8x1xf32>
    %cst_32 = arith.constant 9.99999974E-6 : f32
    %100 = vector.broadcast %cst_32 : f32 to vector<8x1xf32>
    %101 = arith.addf %98, %100 : vector<8x1xf32>
    %102 = math.rsqrt %101 : vector<8x1xf32>
    %103 = arith.mulf %99, %102 : vector<8x1xf32>
    %c0_33 = arith.constant 0 : index
    %c0_34 = arith.constant 0 : index
    %104 = vector.load %arg5[%c0_33, %c0_34] : memref<8x1xf32, #tpu.memory_space<vmem>>, vector<8x1xf32>
    %105 = arith.mulf %89, %103 : vector<8x1xf32>
    %106 = arith.subf %104, %105 : vector<8x1xf32>
    %107 = vector.broadcast %103 : vector<8x1xf32> to vector<8x512xf32>
    %108 = arith.mulf %85, %107 : vector<8x512xf32>
    %109 = vector.broadcast %106 : vector<8x1xf32> to vector<8x512xf32>
    %110 = arith.addf %108, %109 : vector<8x512xf32>
    %cst_35 = arith.constant 0.000000e+00 : f32
    %111 = vector.broadcast %cst_35 : f32 to vector<8x512xf32>
    %112 = arith.maximumf %110, %111 : vector<8x512xf32>
    %113 = tpu.iota {dimensions = array<i32: 1>} : vector<8x512xi32>
    %c255_i32_36 = arith.constant 255 : i32
    %114 = vector.broadcast %c255_i32_36 : i32 to vector<8x512xi32>
    %115 = arith.andi %113, %114 : vector<8x512xi32>
    %c4_i32_37 = arith.constant 4 : i32
    %116 = vector.broadcast %c4_i32_37 : i32 to vector<8x512xi32>
    %117 = arith.shrsi %115, %116 : vector<8x512xi32>
    %c15_i32_38 = arith.constant 15 : i32
    %118 = vector.broadcast %c15_i32_38 : i32 to vector<8x512xi32>
    %119 = arith.andi %115, %118 : vector<8x512xi32>
    %c17_i32_39 = arith.constant 17 : i32
    %120 = tpu.dynamic_rotate %112 by %c17_i32_39 dim 1 : vector<8x512xf32>, i32 -> vector<8x512xf32>
    %c1_i32_40 = arith.constant 1 : i32
    %121 = vector.broadcast %c1_i32_40 : i32 to vector<8x512xi32>
    %122 = arith.cmpi sge, %117, %121 : vector<8x512xi32>
    %c1_i32_41 = arith.constant 1 : i32
    %123 = vector.broadcast %c1_i32_41 : i32 to vector<8x512xi32>
    %124 = arith.cmpi sge, %119, %123 : vector<8x512xi32>
    %125 = arith.andi %122, %124 : vector<8x512xi1>
    %cst_42 = arith.constant 0.000000e+00 : f32
    %126 = vector.broadcast %cst_42 : f32 to vector<8x512xf32>
    %127 = arith.select %125, %120, %126 : vector<8x512xi1>, vector<8x512xf32>
    %c16_i32_43 = arith.constant 16 : i32
    %128 = tpu.dynamic_rotate %112 by %c16_i32_43 dim 1 : vector<8x512xf32>, i32 -> vector<8x512xf32>
    %c1_i32_44 = arith.constant 1 : i32
    %129 = vector.broadcast %c1_i32_44 : i32 to vector<8x512xi32>
    %130 = arith.cmpi sge, %117, %129 : vector<8x512xi32>
    %cst_45 = arith.constant 0.000000e+00 : f32
    %131 = vector.broadcast %cst_45 : f32 to vector<8x512xf32>
    %132 = arith.select %130, %128, %131 : vector<8x512xi1>, vector<8x512xf32>
    %c15_i32_46 = arith.constant 15 : i32
    %133 = tpu.dynamic_rotate %112 by %c15_i32_46 dim 1 : vector<8x512xf32>, i32 -> vector<8x512xf32>
    %c1_i32_47 = arith.constant 1 : i32
    %134 = vector.broadcast %c1_i32_47 : i32 to vector<8x512xi32>
    %135 = arith.cmpi sge, %117, %134 : vector<8x512xi32>
    %c14_i32_48 = arith.constant 14 : i32
    %136 = vector.broadcast %c14_i32_48 : i32 to vector<8x512xi32>
    %137 = arith.cmpi sle, %119, %136 : vector<8x512xi32>
    %138 = arith.andi %135, %137 : vector<8x512xi1>
    %cst_49 = arith.constant 0.000000e+00 : f32
    %139 = vector.broadcast %cst_49 : f32 to vector<8x512xf32>
    %140 = arith.select %138, %133, %139 : vector<8x512xi1>, vector<8x512xf32>
    %c1_i32_50 = arith.constant 1 : i32
    %141 = tpu.dynamic_rotate %112 by %c1_i32_50 dim 1 : vector<8x512xf32>, i32 -> vector<8x512xf32>
    %c1_i32_51 = arith.constant 1 : i32
    %142 = vector.broadcast %c1_i32_51 : i32 to vector<8x512xi32>
    %143 = arith.cmpi sge, %119, %142 : vector<8x512xi32>
    %cst_52 = arith.constant 0.000000e+00 : f32
    %144 = vector.broadcast %cst_52 : f32 to vector<8x512xf32>
    %145 = arith.select %143, %141, %144 : vector<8x512xi1>, vector<8x512xf32>
    %c511_i32 = arith.constant 511 : i32
    %146 = tpu.dynamic_rotate %112 by %c511_i32 dim 1 : vector<8x512xf32>, i32 -> vector<8x512xf32>
    %c14_i32_53 = arith.constant 14 : i32
    %147 = vector.broadcast %c14_i32_53 : i32 to vector<8x512xi32>
    %148 = arith.cmpi sle, %119, %147 : vector<8x512xi32>
    %cst_54 = arith.constant 0.000000e+00 : f32
    %149 = vector.broadcast %cst_54 : f32 to vector<8x512xf32>
    %150 = arith.select %148, %146, %149 : vector<8x512xi1>, vector<8x512xf32>
    %c497_i32 = arith.constant 497 : i32
    %151 = tpu.dynamic_rotate %112 by %c497_i32 dim 1 : vector<8x512xf32>, i32 -> vector<8x512xf32>
    %c14_i32_55 = arith.constant 14 : i32
    %152 = vector.broadcast %c14_i32_55 : i32 to vector<8x512xi32>
    %153 = arith.cmpi sle, %117, %152 : vector<8x512xi32>
    %c1_i32_56 = arith.constant 1 : i32
    %154 = vector.broadcast %c1_i32_56 : i32 to vector<8x512xi32>
    %155 = arith.cmpi sge, %119, %154 : vector<8x512xi32>
    %156 = arith.andi %153, %155 : vector<8x512xi1>
    %cst_57 = arith.constant 0.000000e+00 : f32
    %157 = vector.broadcast %cst_57 : f32 to vector<8x512xf32>
    %158 = arith.select %156, %151, %157 : vector<8x512xi1>, vector<8x512xf32>
    %c496_i32 = arith.constant 496 : i32
    %159 = tpu.dynamic_rotate %112 by %c496_i32 dim 1 : vector<8x512xf32>, i32 -> vector<8x512xf32>
    %c14_i32_58 = arith.constant 14 : i32
    %160 = vector.broadcast %c14_i32_58 : i32 to vector<8x512xi32>
    %161 = arith.cmpi sle, %117, %160 : vector<8x512xi32>
    %cst_59 = arith.constant 0.000000e+00 : f32
    %162 = vector.broadcast %cst_59 : f32 to vector<8x512xf32>
    %163 = arith.select %161, %159, %162 : vector<8x512xi1>, vector<8x512xf32>
    %c495_i32 = arith.constant 495 : i32
    %164 = tpu.dynamic_rotate %112 by %c495_i32 dim 1 : vector<8x512xf32>, i32 -> vector<8x512xf32>
    %c14_i32_60 = arith.constant 14 : i32
    %165 = vector.broadcast %c14_i32_60 : i32 to vector<8x512xi32>
    %166 = arith.cmpi sle, %117, %165 : vector<8x512xi32>
    %c14_i32_61 = arith.constant 14 : i32
    %167 = vector.broadcast %c14_i32_61 : i32 to vector<8x512xi32>
    %168 = arith.cmpi sle, %119, %167 : vector<8x512xi32>
    %169 = arith.andi %166, %168 : vector<8x512xi1>
    %cst_62 = arith.constant 0.000000e+00 : f32
    %170 = vector.broadcast %cst_62 : f32 to vector<8x512xf32>
    %171 = arith.select %169, %164, %170 : vector<8x512xi1>, vector<8x512xf32>
    %172 = tpu.concatenate %127, %132, %140, %145, %112, %150, %158, %163, %171 in 0 : vector<8x512xf32>, vector<8x512xf32>, vector<8x512xf32>, vector<8x512xf32>, vector<8x512xf32>, vector<8x512xf32>, vector<8x512xf32>, vector<8x512xf32>, vector<8x512xf32> -> vector<72x512xf32>
    %c0_63 = arith.constant 0 : index
    %c0_64 = arith.constant 0 : index
    %173 = vector.load %arg6[%c0_63, %c0_64] : memref<8x72xf32, #tpu.memory_space<vmem>>, vector<8x72xf32>
    %cst_65 = arith.constant dense<0.000000e+00> : vector<8x512xf32>
    %174 = tpu.matmul %173, %172, %cst_65 {dimension_numbers = #tpu.dot_dimension_numbers<[1], [0], [0], [1], [0, 0, 1, 1], [], []>} : vector<8x72xf32>, vector<72x512xf32>, vector<8x512xf32> -> vector<8x512xf32>
    %c0_66 = arith.constant 0 : index
    %c0_67 = arith.constant 0 : index
    %175 = vector.load %arg7[%c0_66, %c0_67] : memref<8x1xf32, #tpu.memory_space<vmem>>, vector<8x1xf32>
    %176 = vector.broadcast %175 : vector<8x1xf32> to vector<8x512xf32>
    %177 = arith.addf %174, %176 : vector<8x512xf32>
    %cst_68 = arith.constant dense<0.000000e+00> : vector<8xf32>
    %178 = vector.multi_reduction <add>, %177, %cst_68 [1] : vector<8x512xf32> to vector<8xf32>
    %179 = vector.shape_cast %178 : vector<8xf32> to vector<8x1xf32>
    %cst_69 = arith.constant 5.120000e+02 : f32
    %180 = vector.broadcast %cst_69 : f32 to vector<8x1xf32>
    %181 = arith.divf %179, %180 : vector<8x1xf32>
    %182 = vector.broadcast %181 : vector<8x1xf32> to vector<8x512xf32>
    %183 = arith.subf %177, %182 : vector<8x512xf32>
    %184 = vector.broadcast %181 : vector<8x1xf32> to vector<8x512xf32>
    %185 = arith.subf %177, %184 : vector<8x512xf32>
    %186 = arith.mulf %183, %185 : vector<8x512xf32>
    %cst_70 = arith.constant dense<0.000000e+00> : vector<8xf32>
    %187 = vector.multi_reduction <add>, %186, %cst_70 [1] : vector<8x512xf32> to vector<8xf32>
    %188 = vector.shape_cast %187 : vector<8xf32> to vector<8x1xf32>
    %cst_71 = arith.constant 5.120000e+02 : f32
    %189 = vector.broadcast %cst_71 : f32 to vector<8x1xf32>
    %190 = arith.divf %188, %189 : vector<8x1xf32>
    %c0_72 = arith.constant 0 : index
    %c0_73 = arith.constant 0 : index
    %191 = vector.load %arg8[%c0_72, %c0_73] : memref<8x1xf32, #tpu.memory_space<vmem>>, vector<8x1xf32>
    %cst_74 = arith.constant 9.99999974E-6 : f32
    %192 = vector.broadcast %cst_74 : f32 to vector<8x1xf32>
    %193 = arith.addf %190, %192 : vector<8x1xf32>
    %194 = math.rsqrt %193 : vector<8x1xf32>
    %195 = arith.mulf %191, %194 : vector<8x1xf32>
    %c0_75 = arith.constant 0 : index
    %c0_76 = arith.constant 0 : index
    %196 = vector.load %arg9[%c0_75, %c0_76] : memref<8x1xf32, #tpu.memory_space<vmem>>, vector<8x1xf32>
    %197 = arith.mulf %181, %195 : vector<8x1xf32>
    %198 = arith.subf %196, %197 : vector<8x1xf32>
    %199 = vector.broadcast %195 : vector<8x1xf32> to vector<8x512xf32>
    %200 = arith.mulf %177, %199 : vector<8x512xf32>
    %201 = vector.broadcast %198 : vector<8x1xf32> to vector<8x512xf32>
    %202 = arith.addf %200, %201 : vector<8x512xf32>
    %cst_77 = arith.constant 0.000000e+00 : f32
    %203 = vector.broadcast %cst_77 : f32 to vector<8x512xf32>
    %204 = arith.maximumf %202, %203 : vector<8x512xf32>
    %205 = vector.extract_strided_slice %204 {offsets = [0, 0], sizes = [8, 256], strides = [1, 1]} : vector<8x512xf32> to vector<8x256xf32>
    %c0_78 = arith.constant 0 : index
    %c0_79 = arith.constant 0 : index
    %c0_80 = arith.constant 0 : index
    %206 = vector.load %arg10[%c0_78, %c0_79, %c0_80] : memref<2x8x256xf32, #tpu.memory_space<vmem>>, vector<1x8x256xf32>
    %207 = vector.shape_cast %206 : vector<1x8x256xf32> to vector<8x256xf32>
    %208 = vector.shape_cast %205 : vector<8x256xf32> to vector<1x8x256xf32>
    tpu.vector_store %arg10[%c0_78, %c0_79, %c0_80], %208 {strides = array<i32>} : memref<2x8x256xf32, #tpu.memory_space<vmem>>, vector<1x8x256xf32>,
    %209 = vector.extract_strided_slice %204 {offsets = [0, 256], sizes = [8, 256], strides = [1, 1]} : vector<8x512xf32> to vector<8x256xf32>
    %c1 = arith.constant 1 : index
    %c0_81 = arith.constant 0 : index
    %c0_82 = arith.constant 0 : index
    %210 = vector.load %arg10[%c1, %c0_81, %c0_82] : memref<2x8x256xf32, #tpu.memory_space<vmem>>, vector<1x8x256xf32>
    %211 = vector.shape_cast %210 : vector<1x8x256xf32> to vector<8x256xf32>
    %212 = vector.shape_cast %209 : vector<8x256xf32> to vector<1x8x256xf32>
    tpu.vector_store %arg10[%c1, %c0_81, %c0_82], %212 {strides = array<i32>} : memref<2x8x256xf32, #tpu.memory_space<vmem>>, vector<1x8x256xf32>,
    return
  }
  func.func @transform_0(%arg0: i32) -> (i32, i32) {
    %c0_i32 = arith.constant 0 : i32
    %c0_i32_0 = arith.constant 0 : i32
    %c0_i32_1 = arith.constant 0 : i32
    return %c0_i32, %c0_i32_0 : i32, i32
  }
  func.func @transform_1(%arg0: i32) -> (i32, i32) {
    %c0_i32 = arith.constant 0 : i32
    %c0_i32_0 = arith.constant 0 : i32
    %c0_i32_1 = arith.constant 0 : i32
    return %c0_i32, %c0_i32_0 : i32, i32
  }
  func.func @transform_2(%arg0: i32) -> (i32, i32) {
    %c0_i32 = arith.constant 0 : i32
    %c0_i32_0 = arith.constant 0 : i32
    %c0_i32_1 = arith.constant 0 : i32
    return %c0_i32, %c0_i32_0 : i32, i32
  }
  func.func @transform_3(%arg0: i32) -> (i32, i32) {
    %c0_i32 = arith.constant 0 : i32
    %c0_i32_0 = arith.constant 0 : i32
    %c0_i32_1 = arith.constant 0 : i32
    return %c0_i32, %c0_i32_0 : i32, i32
  }
  func.func @transform_4(%arg0: i32) -> (i32, i32) {
    %c0_i32 = arith.constant 0 : i32
    %c0_i32_0 = arith.constant 0 : i32
    %c0_i32_1 = arith.constant 0 : i32
    return %c0_i32, %c0_i32_0 : i32, i32
  }
  func.func @transform_5(%arg0: i32) -> (i32, i32) {
    %c0_i32 = arith.constant 0 : i32
    %c0_i32_0 = arith.constant 0 : i32
    %c0_i32_1 = arith.constant 0 : i32
    return %c0_i32, %c0_i32_0 : i32, i32
  }
  func.func @transform_6(%arg0: i32) -> (i32, i32) {
    %c0_i32 = arith.constant 0 : i32
    %c0_i32_0 = arith.constant 0 : i32
    %c0_i32_1 = arith.constant 0 : i32
    return %c0_i32, %c0_i32_0 : i32, i32
  }
  func.func @transform_7(%arg0: i32) -> (i32, i32) {
    %c0_i32 = arith.constant 0 : i32
    %c0_i32_0 = arith.constant 0 : i32
    %c0_i32_1 = arith.constant 0 : i32
    return %c0_i32, %c0_i32_0 : i32, i32
  }
  func.func @transform_8(%arg0: i32) -> (i32, i32) {
    %c0_i32 = arith.constant 0 : i32
    %c0_i32_0 = arith.constant 0 : i32
    %c0_i32_1 = arith.constant 0 : i32
    return %c0_i32, %c0_i32_0 : i32, i32
  }
  func.func @transform_9(%arg0: i32) -> (i32, i32, i32) {
    %c0_i32 = arith.constant 0 : i32
    %c0_i32_0 = arith.constant 0 : i32
    %c0_i32_1 = arith.constant 0 : i32
    %c0_i32_2 = arith.constant 0 : i32
    return %c0_i32, %c0_i32_0, %c0_i32_1 : i32, i32, i32
  }
}

</mosaic_0001>

<bundles_post_ra>
// kernel: _double_conv_pallas.1
= control target key start
LH: loop header
LB: loop body
LE: loop exit
PB: predicated region body
PF: predicated region fallthrough
CT: control target
= control target key end

     0   :  { %s832_s11 = smov 111   ;;  %s833_s12 = smov 112   ;;  %v837_v2 = vmov 0.0   ;;  %v839_v3 = vmov 0   ;;  %v34_v5 = vlaneseq  ;;  %vm155_vm8 = vcmask 1043456   ;;  %s1392_s0 = inlined_call_operand.vmem [shape: f32[8,256], index: 0, kind: input, shape index: {}]   ;;  %s1393_s2 = inlined_call_operand.vmem [shape: f32[8,1], index: 2, kind: input, shape index: {}]   ;;  %s1394_s1 = inlined_call_operand.vmem [shape: f32[8,36], index: 1, kind: input, shape index: {}]   ;;  %s1395_s3 = inlined_call_operand.vmem [shape: f32[8,1], index: 3, kind: input, shape index: {}]   ;;  %s1396_s4 = inlined_call_operand.vmem [shape: f32[8,1], index: 4, kind: input, shape index: {}]   ;;  %s1397_s6 = inlined_call_operand.vmem [shape: f32[8,1], index: 6, kind: input, shape index: {}]   ;;  %s1398_s5 = inlined_call_operand.vmem [shape: f32[8,72], index: 5, kind: input, shape index: {}]   ;;  %s1399_s7 = inlined_call_operand.vmem [shape: f32[8,1], index: 7, kind: input, shape index: {}]   ;;  %s1400_s8 = inlined_call_operand.vmem [shape: f32[8,1], index: 8, kind: input, shape index: {}]   ;;  %s1401_s9 = inlined_call_operand.vmem [shape: f32[2,8,256], index: 9, kind: output, shape index: {}]  }
   0x1   :  { %v895_v0 = vld [vmem:[%s1392_s0] sm:$0xff]  ;;  %v904_v1 = vld [vmem:[%s1392_s0 + $0x8] sm:$0xff]  ;;  %s834_s15 = smov 127   ;;  %s835_s16 = smov 113   ;;  %283 = vmatprep.mubr.f32.mxu0 %v837_v2  ;;  %354 = vmatprep.mubr.f32.mxu1 %v837_v2 }
   0x2   :  { %120 = vrot.lane.b32.xlu1 %v895_v0, %s832_s11  ;;  %111 = vrot.lane.b32.xlu0 %v895_v0, %s833_s12  ;;  %s836_s0 = smov 1   ;;  %s838_s17 = smov 16   ;;  %v201_v4 = vld [vmem:[%s1393_s2] sm:$0xff]  ;;  %v939_v6 = vand.u32 127, %v34_v5  ;;  %v179_v41 = vrot.slane %v904_v1, 4  ;;  %v178_v55 = vrot.slane %v895_v0, 4 }
   0x3   :  { %826 = vset.pattern.permute.xlu0 %v839_v3  ;;  %827 = vset.pattern.permute.xlu1 %v839_v3  ;;  %s840_s18 = smov 15   ;;  %s841_s19 = smov 17  }
   0x4   :  { %v36_v7 = vadd.s32 128, %v939_v6  ;;  %v37_v8 = vand.u32 255, %v939_v6  ;;  %vm124_vm4 = vcmp.lt.s32.totalorder %v939_v6, 111  ;;  %vm1407_vm6 = vcmp.lt.s32.totalorder %v939_v6, 112 }
   0x5   :  { %vm1402_vm9 = vcmp.lt.s32.totalorder %v939_v6, 127  ;;  %vm1404_vm12 = vcmp.lt.s32.totalorder %v939_v6, 113  ;;  %vm1403_vm15 = vcmp.lt.s32.totalorder %v939_v6, 1 }
   0x6   :  { %122 = vrot.lane.b32.xlu1 %v904_v1, %s832_s11  ;;  %113 = vrot.lane.b32.xlu0 %v904_v1, %s833_s12  ;;  %v38_v9 = vand.u32 255, %v36_v7  ;;  %v943_v10 = vshra.s32 %v37_v8, 4  ;;  %v945_v11 = vand.u32 15, %v37_v8 }
   0x8   :  { %v947_v12 = vshra.s32 %v38_v9, 4  ;;  %v949_v13 = vand.u32 15, %v38_v9  ;;  %vm1405_vm0 = vcmp.le.s32.totalorder %v943_v10, 14  ;;  %vm1409_vm1 = vcmp.le.s32.totalorder %v945_v11, 14 }
   0x9   :  { %vm960_vm5 = vmand %vm1405_vm0, %vm1409_vm1  ;;  %vm1414_vm10 = vcmp.ge.s32.totalorder %v945_v11, 1 }
   0xa   :  { %91 = vrot.lane.b32.xlu1 %v904_v1, %s834_s15  ;;  %89 = vrot.lane.b32.xlu0 %v895_v0, %s834_s15  ;;  %vm1406_vm2 = vcmp.le.s32.totalorder %v947_v12, 14  ;;  %vm75_vm3 = vcmp.le.s32.totalorder %v949_v13, 14  ;;  %vm1415_vm11 = vcmp.ge.s32.totalorder %v949_v13, 1  ;;  %vm1007_vm13 = vmand %vm1405_vm0, %vm1414_vm10 }
   0xb   :  { %vm969_vm7 = vmand %vm1406_vm2, %vm75_vm3 }
   0xc   :  { %vm1017_vm14 = vmand %vm1406_vm2, %vm1415_vm11 }
   0xe   :  { %100 = vrot.lane.b32.xlu1 %v904_v1, %s835_s16  ;;  %98 = vrot.lane.b32.xlu0 %v895_v0, %s835_s16 }
  0x12   :  { %82 = vrot.lane.b32.xlu1 %v904_v1, %s836_s0  ;;  %80 = vrot.lane.b32.xlu0 %v895_v0, %s836_s0 }
  0x16   :  { %60 = vrot.lane.b32.xlu1 %v904_v1, %s838_s17  ;;  %58 = vrot.lane.b32.xlu0 %v895_v0, %s838_s17 }
  0x1a   :  { %69 = vrot.lane.b32.xlu1 %v904_v1, %s840_s18  ;;  %67 = vrot.lane.b32.xlu0 %v895_v0, %s840_s18 }
  0x1e   :  { %45 = vrot.lane.b32.xlu1 %v904_v1, %s841_s19  ;;  %43 = vrot.lane.b32.xlu0 %v895_v0, %s841_s19 }
  0x22   :  { %204 = vperm.xlu0 %826, %v201_v4  }
  0x74   :  { %v121_v14 = vpop.permute.xlu1 %120  ;;  %v112_v15 = vpop.permute.xlu0 %111 }
  0x78   :  { %v123_v18 = vpop.permute.xlu1 %122  ;;  %v114_v19 = vpop.permute.xlu0 %113 }
  0x79   :  { %v125_v20 = vsel %vm124_vm4, %v121_v14, %v123_v18  ;;  %v126_v21 = vsel %vm124_vm4, %v123_v18, %v121_v14  ;;  %v116_v22 = vsel %vm1407_vm6, %v112_v15, %v114_v19  ;;  %v117_v25 = vsel %vm1407_vm6, %v114_v19, %v112_v15 }
  0x7a   :  { %v130_v23 = vsel %vm969_vm7, %v126_v21, 0.0  ;;  %v129_v24 = vsel %vm960_vm5, %v125_v20, 0.0  ;;  %v118_v30 = vsel %vm1405_vm0, %v116_v22, 0.0  ;;  %v119_v33 = vsel %vm1406_vm2, %v117_v25, 0.0 }
  0x7b   :  { %774 = vmatprep.subr.msk.mxu0 %vm155_vm8, %v130_v23  ;;  %v190_v26 = vrot.slane %v129_v24, 4  ;;  %v191_v27 = vrot.slane %v130_v23, 4  ;;  %v151_v38 = vrot.slane %v118_v30, 4  ;;  %v152_v42 = vrot.slane %v119_v33, 4 }
  0x7c   :  { %775 = vmatpush1.msk.msra.mxu0 %vm155_vm8, %v129_v24  ;;  %v92_v28 = vpop.permute.xlu1 %91  ;;  %v90_v29 = vpop.permute.xlu0 %89  ;;  %vm1410_vm0 = vcmp.lt.s32.totalorder %v939_v6, 15 }
  0x7d   :  { %v94_v31 = vsel %vm1402_vm9, %v90_v29, %v92_v28  ;;  %v95_v32 = vsel %vm1402_vm9, %v92_v28, %v90_v29  ;;  %777 = vmatprep.subr.msk.mxu1 %vm155_vm8, %v191_v27  ;;  %vm1408_vm9 = vcmp.lt.s32.totalorder %v939_v6, 16 }
  0x7e   :  { %v97_v34 = vsel %vm75_vm3, %v95_v32, 0.0  ;;  %778 = vmatpush1.msk.msra.mxu1 %vm155_vm8, %v190_v26  ;;  %v96_v36 = vsel %vm1409_vm1, %v94_v31, 0.0 }
  0x7f   :  { %v146_v43 = vrot.slane %v97_v34, 4  ;;  %v145_v46 = vrot.slane %v96_v36, 4  ;;  %v197_v62 = vsel %vm155_vm8, %v179_v41, %v97_v34  ;;  %v196_v3 = vsel %vm155_vm8, %v178_v55, %v96_v36 }
  0x80   :  { %v101_v39 = vpop.permute.xlu1 %100  ;;  %v99_v40 = vpop.permute.xlu0 %98 }
  0x81   :  { %v103_v44 = vsel %vm1404_vm12, %v99_v40, %v101_v39  ;;  %v104_v45 = vsel %vm1404_vm12, %v101_v39, %v99_v40  ;;  %v161_v56 = vsel %vm155_vm8, %v904_v1, %v146_v43  ;;  %v160_v61 = vsel %vm155_vm8, %v895_v0, %v145_v46 }
  0x82   :  { %v109_v47 = vsel %vm1007_vm13, %v103_v44, 0.0  ;;  %v110_v48 = vsel %vm1017_vm14, %v104_v45, 0.0  ;;  %vm1413_vm12 = vcmp.ge.s32.totalorder %v947_v12, 1 }
  0x83   :  { %v184_v49 = vrot.slane %v109_v47, 4  ;;  %v185_v50 = vrot.slane %v110_v48, 4  ;;  %v163_v51 = vsel %vm155_vm8, %v110_v48, %v152_v42  ;;  %v162_v52 = vsel %vm155_vm8, %v109_v47, %v151_v38  ;;  %vm1070_vm6 = vmand %vm1413_vm12, %vm75_vm3  ;;  %v200_v48 = vld [vmem:[%s1394_s1] sm:$0xff] }
  0x84   :  { %v83_v53 = vpop.permute.xlu1 %82  ;;  %243 = vmatprep.subr.mxu0 %v163_v51  ;;  %v81_v54 = vpop.permute.xlu0 %80 }
  0x85   :  { %244 = vmatpush1.msra.mxu0 %v162_v52  ;;  %v199_v57 = vsel %vm155_vm8, %v185_v50, %v119_v33  ;;  %v198_v58 = vsel %vm155_vm8, %v184_v49, %v118_v30  ;;  %v85_v59 = vsel %vm1403_vm15, %v81_v54, %v83_v53  ;;  %v86_v60 = vsel %vm1403_vm15, %v83_v53, %v81_v54 }
  0x86   :  { %245 = vmatprep.subr.mxu0 %v161_v56  ;;  %314 = vmatprep.subr.mxu1 %v199_v57  ;;  %v87_v4 = vsel %vm1414_vm10, %v86_v60, 0.0  ;;  %v88_v5 = vsel %vm1415_vm11, %v85_v59, 0.0  ;;  %vm1411_vm15 = vcmp.ge.s32.totalorder %v943_v10, 1 }
  0x87   :  { %246 = vmatpush1.msra.mxu0 %v160_v61  ;;  %315 = vmatpush1.msra.mxu1 %v198_v58  ;;  %vm1062_vm2 = vmand %vm1411_vm15, %vm1409_vm1  ;;  %v139_v14 = vrot.slane %v87_v4, 4  ;;  %v140_v15 = vrot.slane %v88_v5, 4 }
  0x88   :  { %v61_v63 = vpop.permute.xlu1 %60  ;;  %316 = vmatprep.subr.mxu1 %v197_v62  ;;  %v59_v1 = vpop.permute.xlu0 %58  ;;  %vm1091_vm1 = vmand %vm1411_vm15, %vm1414_vm10 }
  0x89   :  { %317 = vmatpush1.msra.mxu1 %v196_v3  ;;  %v63_v0 = vsel %vm1408_vm9, %v59_v1, %v61_v63  ;;  %v64_v7 = vsel %vm1408_vm9, %v61_v63, %v59_v1  ;;  %vm1412_vm9 = vcmp.lt.s32.totalorder %v939_v6, 17 }
  0x8a   :  { %v65_v20 = vsel %vm1411_vm15, %v64_v7, 0.0  ;;  %v66_v21 = vsel %vm1413_vm12, %v63_v0, 0.0  ;;  %vm207_vm15 = vcmask 293888  }
  0x8b   :  { %v133_v32 = vrot.slane %v65_v20, 4  ;;  %v134_v33 = vrot.slane %v66_v21, 4 }
  0x8c   :  { %v70_v18 = vpop.permute.xlu1 %69  ;;  %v68_v19 = vpop.permute.xlu0 %67 }
  0x8d   :  { %v72_v22 = vsel %vm1410_vm0, %v68_v19, %v70_v18  ;;  %v73_v23 = vsel %vm1410_vm0, %v70_v18, %v68_v19  ;;  %vm1100_vm0 = vmand %vm1413_vm12, %vm1415_vm11  ;;  %vm1435_vm11 = vcmp.le.s32.totalorder %v947_v12, 14 }
  0x8e   :  { %v78_v24 = vsel %vm1062_vm2, %v73_v23, 0.0  ;;  %v79_v25 = vsel %vm1070_vm6, %v72_v22, 0.0 }
  0x8f   :  { %v172_v27 = vrot.slane %v78_v24, 4  ;;  %v173_v28 = vrot.slane %v79_v25, 4  ;;  %v159_v29 = vsel %vm155_vm8, %v79_v25, %v140_v15  ;;  %v158_v31 = vsel %vm155_vm8, %v78_v24, %v139_v14  ;;  %v382_v24 = vld [vmem:[%s1395_s3] sm:$0xff] }
  0x90   :  { %v46_v34 = vpop.permute.xlu1 %45  ;;  %247 = vmatprep.subr.mxu0 %v159_v29  ;;  %v44_v36 = vpop.permute.xlu0 %43 }
  0x91   :  { %v48_v38 = vsel %vm1412_vm9, %v44_v36, %v46_v34  ;;  %v49_v39 = vsel %vm1412_vm9, %v46_v34, %v44_v36  ;;  %248 = vmatpush1.msra.mxu0 %v158_v31  ;;  %v195_v40 = vsel %vm155_vm8, %v173_v28, %v88_v5  ;;  %v194_v41 = vsel %vm155_vm8, %v172_v27, %v87_v4  ;;  %v386_v28 = vld [vmem:[%s1396_s4] sm:$0xff] }
  0x92   :  { %v56_v42 = vsel %vm1091_vm1, %v49_v39, 0.0  ;;  %v57_v43 = vsel %vm1100_vm0, %v48_v38, 0.0  ;;  %318 = vmatprep.subr.mxu1 %v195_v40  ;;  %vm1434_vm9 = vcmp.lt.s32.totalorder %v939_v6, 112 }
  0x93   :  { %v166_v44 = vrot.slane %v56_v42, 4  ;;  %v167_v45 = vrot.slane %v57_v43, 4  ;;  %319 = vmatpush1.msra.mxu1 %v194_v41  ;;  %v157_v46 = vsel %vm155_vm8, %v57_v43, %v134_v33  ;;  %v156_v47 = vsel %vm155_vm8, %v56_v42, %v133_v32 }
  0x94   :  { %249 = vmatprep.subr.mxu0 %v157_v46 }
  0x95   :  { %250 = vmatpush1.msra.mxu0 %v156_v47  ;;  %v193_v49 = vsel %vm155_vm8, %v167_v45, %v66_v21  ;;  %v192_v50 = vsel %vm155_vm8, %v166_v44, %v65_v20 }
  0x96   :  { %776 = vmatmul.mubr.msk.f32.vlgmr.msra.gmra.mxu0 %vm207_vm15, %v200_v48  ;;  %320 = vmatprep.subr.mxu1 %v193_v49  ;;  %v412_v49 = vadd.s32 384, %v939_v6 }
  0x97   :  { %321 = vmatpush1.msra.mxu1 %v192_v50  ;;  %638 = vmatprep.mubr.f32.mxu0 %v837_v2  ;;  %v411_v50 = vadd.s32 256, %v939_v6 }
  0x98   :  { %779 = vmatmul.mubr.msk.f32.vlgmr.msra.gmra.mxu1 %vm207_vm15, %v200_v48  ;;  %v564_v48 = vld [vmem:[%s1397_s6] sm:$0xff] }
  0x99   :  { %709 = vmatprep.mubr.f32.mxu1 %v837_v2 }
  0x9d   :  { %v205_v52 = vpop.permute.xlu0 %204 }
 0x156   :  { %v285_v51 = vpop.f32.mrf.mxu0 }
 0x157   :  { %v286_v55 = vadd.f32 %v285_v51, %v205_v52 }
 0x158   :  { %v287_v53 = vpop.f32.mrf.mxu0  ;;  %v356_v54 = vpop.f32.mrf.mxu1 }
 0x159   :  { %v288_v56 = vadd.f32 %v287_v53, %v205_v52  ;;  %v357_v59 = vadd.f32 %v356_v54, %v205_v52  ;;  %v414_v53 = vand.u32 255, %v412_v49  ;;  %v413_v54 = vand.u32 255, %v411_v50 }
 0x15a   :  { %v358_v57 = vpop.f32.mrf.mxu1 }
 0x15b   :  { %v361_v58 = vadd.f32 %v288_v56, %v286_v55  ;;  %v359_v60 = vadd.f32 %v358_v57, %v205_v52  ;;  %v1207_v57 = vshra.s32 %v414_v53, 4 }
 0x15d   :  { %v362_v61 = vadd.f32 %v361_v58, %v357_v59  ;;  %v1209_v58 = vand.u32 15, %v414_v53  ;;  %vm522_vm15 = vcmp.le.s32.totalorder %v1207_v57, 14 }
 0x15f   :  { %v363_v62 = vadd.f32 %v362_v61, %v359_v60  ;;  %v1215_v61 = vand.u32 15, %v413_v54  ;;  %vm1416_vm8 = vcmp.le.s32.totalorder %v1209_v58, 14 }
 0x161   :  { %364 = vadd.xlane.f32.xlu1 %v363_v62  ;;  %vm1417_vm12 = vcmp.le.s32.totalorder %v1215_v61, 14 }
 0x1ea   :  { %v365_v63 = vpop.xlane.xlu1 %364 }
 0x1eb   :  { %v367_v1 = vmul.f32 0.001953125, %v365_v63 }
 0x1ed   :  { %v368_v3 = vsub.f32 %v286_v55, %v367_v1  ;;  %v369_v4 = vsub.f32 %v288_v56, %v367_v1  ;;  %v370_v5 = vsub.f32 %v357_v59, %v367_v1  ;;  %v371_v0 = vsub.f32 %v359_v60, %v367_v1 }
 0x1ef   :  { %v372_v2 = vmul.f32 %v368_v3, %v368_v3  ;;  %v373_v7 = vmul.f32 %v369_v4, %v369_v4  ;;  %v374_v14 = vmul.f32 %v370_v5, %v370_v5  ;;  %v375_v18 = vmul.f32 %v371_v0, %v371_v0 }
 0x1f1   :  { %v376_v15 = vadd.f32 %v373_v7, %v372_v2 }
 0x1f3   :  { %v377_v19 = vadd.f32 %v376_v15, %v374_v14 }
 0x1f5   :  { %v378_v20 = vadd.f32 %v377_v19, %v375_v18 }
 0x1f7   :  { %379 = vadd.xlane.f32.xlu0 %v378_v20 }
 0x280   :  { %v380_v21 = vpop.xlane.xlu0 %379 }
 0x281   :  { %v381_v22 = vmul.f32 0.001953125, %v380_v21 }
 0x283   :  { %v383_v23 = vadd.f32 1e-05, %v381_v22 }
 0x285   :  { %828 = vrsqrt.f32 %v383_v23 }
 0x292   :  { %v829_v25 = vpop.eup %828 }
 0x293   :  { %v385_v27 = vmul.f32 %v829_v25, %v382_v24 }
 0x295   :  { %391 = vperm.xlu1 %827, %v385_v27   ;;  %v387_v29 = vmul.f32 %v385_v27, %v367_v1 }
 0x297   :  { %v388_v31 = vsub.f32 %v386_v28, %v387_v29 }
 0x299   :  { %400 = vperm.xlu0 %826, %v388_v31  }
 0x310   :  { %v392_v32 = vpop.permute.xlu1 %391 }
 0x311   :  { %v394_v33 = vmul.f32 %v392_v32, %v286_v55  ;;  %v395_v34 = vmul.f32 %v392_v32, %v288_v56  ;;  %v396_v38 = vmul.f32 %v392_v32, %v357_v59  ;;  %v397_v45 = vmul.f32 %v392_v32, %v359_v60 }
 0x312   :  { %v1213_v60 = vshra.s32 %v413_v54, 4 }
 0x314   :  { %v401_v36 = vpop.permute.xlu0 %400  ;;  %vm521_vm10 = vcmp.le.s32.totalorder %v1213_v60, 14 }
 0x315   :  { %v403_v39 = vadd.f32 %v401_v36, %v394_v33  ;;  %v404_v40 = vadd.f32 %v401_v36, %v395_v34  ;;  %v405_v41 = vadd.f32 %v401_v36, %v396_v38  ;;  %v406_v46 = vadd.f32 %v401_v36, %v397_v45 }
 0x317   :  { %v1130_v42 = vmax.f32 %v403_v39, 0.0  ;;  %v1132_v43 = vmax.f32 %v404_v40, 0.0  ;;  %v1138_v44 = vmax.f32 %v405_v41, 0.0  ;;  %v1148_v47 = vmax.f32 %v406_v46, 0.0 }
 0x319   :  { %547 = vrot.lane.b32.xlu1 %v1132_v43, %s832_s11  ;;  %545 = vrot.lane.b32.xlu0 %v1130_v42, %s832_s11 }
 0x31d   :  { %549 = vrot.lane.b32.xlu1 %v1138_v44, %s832_s11  ;;  %533 = vrot.lane.b32.xlu0 %v1138_v44, %s833_s12 }
 0x321   :  { %531 = vrot.lane.b32.xlu1 %v1132_v43, %s833_s12  ;;  %511 = vrot.lane.b32.xlu0 %v1132_v43, %s835_s16 }
 0x325   :  { %529 = vrot.lane.b32.xlu1 %v1130_v42, %s833_s12  ;;  %551 = vrot.lane.b32.xlu0 %v1148_v47, %s832_s11 }
 0x329   :  { %513 = vrot.lane.b32.xlu1 %v1138_v44, %s835_s16  ;;  %495 = vrot.lane.b32.xlu0 %v1132_v43, %s834_s15 }
 0x32d   :  { %509 = vrot.lane.b32.xlu1 %v1130_v42, %s835_s16  ;;  %535 = vrot.lane.b32.xlu0 %v1148_v47, %s833_s12 }
 0x331   :  { %497 = vrot.lane.b32.xlu1 %v1138_v44, %s834_s15  ;;  %515 = vrot.lane.b32.xlu0 %v1148_v47, %s835_s16 }
 0x335   :  { %493 = vrot.lane.b32.xlu1 %v1130_v42, %s834_s15  ;;  %479 = vrot.lane.b32.xlu0 %v1132_v43, %s836_s0 }
 0x339   :  { %477 = vrot.lane.b32.xlu1 %v1130_v42, %s836_s0  ;;  %483 = vrot.lane.b32.xlu0 %v1148_v47, %s836_s0 }
 0x33d   :  { %499 = vrot.lane.b32.xlu1 %v1148_v47, %s834_s15  ;;  %459 = vrot.lane.b32.xlu0 %v1132_v43, %s840_s18 }
 0x341   :  { %457 = vrot.lane.b32.xlu1 %v1130_v42, %s840_s18  ;;  %441 = vrot.lane.b32.xlu0 %v1130_v42, %s838_s17 }
 0x345   :  { %463 = vrot.lane.b32.xlu1 %v1148_v47, %s840_s18  ;;  %481 = vrot.lane.b32.xlu0 %v1138_v44, %s836_s0 }
 0x349   :  { %443 = vrot.lane.b32.xlu1 %v1132_v43, %s838_s17  ;;  %419 = vrot.lane.b32.xlu0 %v1130_v42, %s841_s19 }
 0x34d   :  { %447 = vrot.lane.b32.xlu1 %v1148_v47, %s838_s17  ;;  %461 = vrot.lane.b32.xlu0 %v1138_v44, %s840_s18 }
 0x351   :  { %421 = vrot.lane.b32.xlu1 %v1132_v43, %s841_s19  ;;  %445 = vrot.lane.b32.xlu0 %v1138_v44, %s838_s17 }
 0x355   :  { %425 = vrot.lane.b32.xlu1 %v1148_v47, %s841_s19  ;;  %567 = vperm.xlu0 %826, %v564_v48  }
 0x359   :  { %423 = vrot.lane.b32.xlu1 %v1138_v44, %s841_s19 }
 0x38b   :  { %v548_v51 = vpop.permute.xlu1 %547  ;;  %v546_v52 = vpop.permute.xlu0 %545 }
 0x38c   :  { %v555_v62 = vsel %vm124_vm4, %v546_v52, %v548_v51 }
 0x38f   :  { %v550_v55 = vpop.permute.xlu1 %549  ;;  %v534_v56 = vpop.permute.xlu0 %533 }
 0x390   :  { %v554_v59 = vsel %vm124_vm4, %v548_v51, %v550_v55 }
 0x391   :  { %780 = vmatprep.subr.msk.mxu0 %vm969_vm7, %v554_v59  ;;  %vm557_vm7 = vmand %vm521_vm10, %vm1417_vm12 }
 0x392   :  { %781 = vmatpush1.msk.msra.mxu0 %vm960_vm5, %v555_v62  ;;  %vm558_vm5 = vmand %vm522_vm15, %vm1416_vm8  ;;  %vm1437_vm8 = vcmp.lt.s32.totalorder %v939_v6, 113 }
 0x393   :  { %v532_v63 = vpop.permute.xlu1 %531  ;;  %v512_v1 = vpop.permute.xlu0 %511  ;;  %vm1438_vm12 = vmmov %vm1437_vm8 }
 0x394   :  { %v538_v3 = vsel %vm1434_vm9, %v532_v63, %v534_v56 }
 0x395   :  { %782 = vmatprep.subr.msk.mxu0 %vm1435_vm11, %v538_v3  ;;  %vm1436_vm11 = vcmp.le.s32.totalorder %v943_v10, 14 }
 0x397   :  { %v530_v16 = vpop.permute.xlu1 %529  ;;  %v552_v17 = vpop.permute.xlu0 %551 }
 0x398   :  { %v539_v4 = vsel %vm1434_vm9, %v530_v16, %v532_v63  ;;  %v553_v5 = vsel %vm124_vm4, %v550_v55, %v552_v17  ;;  %v556_v0 = vsel %vm124_vm4, %v552_v17, %v546_v52  ;;  %vm434_vm9 = vcmp.ge.s32.totalorder %v1209_v58, 1 }
 0x399   :  { %783 = vmatpush1.msk.msra.mxu0 %vm1436_vm11, %v539_v4  ;;  %797 = vmatprep.subr.msk.mxu1 %vm558_vm5, %v556_v0  ;;  %vm1439_vm4 = vcmp.lt.s32.totalorder %v939_v6, 112  ;;  %vm1442_vm11 = vmmov %vm1437_vm8 }
 0x39a   :  { %798 = vmatpush1.msk.msra.mxu1 %vm557_vm7, %v553_v5  ;;  %vm1440_vm5 = vmmov %vm1439_vm4  ;;  %vm433_vm7 = vcmp.ge.s32.totalorder %v1215_v61, 1 }
 0x39b   :  { %v514_v2 = vpop.permute.xlu1 %513  ;;  %v496_v7 = vpop.permute.xlu0 %495 }
 0x39c   :  { %v518_v14 = vsel %vm1437_vm8, %v512_v1, %v514_v2 }
 0x39d   :  { %784 = vmatprep.subr.msk.mxu0 %vm1017_vm14, %v518_v14  ;;  %vm523_vm14 = vmand %vm521_vm10, %vm433_vm7 }
 0x39f   :  { %v510_v15 = vpop.permute.xlu1 %509  ;;  %v536_v18 = vpop.permute.xlu0 %535 }
 0x3a0   :  { %v519_v19 = vsel %vm1438_vm12, %v510_v15, %v512_v1  ;;  %v537_v20 = vsel %vm1439_vm4, %v534_v56, %v536_v18  ;;  %v540_v21 = vsel %vm1440_vm5, %v536_v18, %v530_v16  ;;  %vm524_vm12 = vmand %vm522_vm15, %vm434_vm9  ;;  %vm1445_vm4 = vcmp.lt.s32.totalorder %v939_v6, 1  ;;  %v563_v56 = vld [vmem:[%s1398_s5] sm:$0xff] }
 0x3a1   :  { %785 = vmatpush1.msk.msra.mxu0 %vm1007_vm13, %v519_v19  ;;  %799 = vmatprep.subr.msk.mxu1 %vm522_vm15, %v540_v21  ;;  %vm1441_vm13 = vcmp.lt.s32.totalorder %v939_v6, 127  ;;  %vm1447_vm5 = vcmp.ge.s32.totalorder %v949_v13, 1 }
 0x3a2   :  { %800 = vmatpush1.msk.msra.mxu1 %vm521_vm10, %v537_v20  ;;  %vm1443_vm15 = vmmov %vm1441_vm13  ;;  %vm1444_vm10 = vcmp.le.s32.totalorder %v945_v11, 14 }
 0x3a3   :  { %v498_v37 = vpop.permute.xlu1 %497  ;;  %v516_v22 = vpop.permute.xlu0 %515 }
 0x3a4   :  { %v502_v35 = vsel %vm1441_vm13, %v496_v7, %v498_v37  ;;  %v517_v23 = vsel %vm1437_vm8, %v514_v2, %v516_v22  ;;  %v520_v24 = vsel %vm1442_vm11, %v516_v22, %v510_v15  ;;  %vm1450_vm8 = vcmp.le.s32.totalorder %v1209_v58, 14 }
 0x3a5   :  { %786 = vmatprep.subr.msk.mxu0 %vm75_vm3, %v502_v35  ;;  %801 = vmatprep.subr.msk.mxu1 %vm524_vm12, %v520_v24  ;;  %vm1446_vm3 = vmmov %vm1445_vm4  ;;  %vm1448_vm12 = vcmp.ge.s32.totalorder %v945_v11, 1  ;;  %vm1451_vm11 = vcmp.le.s32.totalorder %v1215_v61, 14 }
 0x3a6   :  { %802 = vmatpush1.msk.msra.mxu1 %vm523_vm14, %v517_v23  ;;  %vm1449_vm14 = vmmov %vm1441_vm13 }
 0x3a7   :  { %v494_v25 = vpop.permute.xlu1 %493  ;;  %v480_v27 = vpop.permute.xlu0 %479 }
 0x3a8   :  { %v503_v28 = vsel %vm1443_vm15, %v494_v25, %v496_v7  ;;  %vm1452_vm15 = vcmp.lt.s32.totalorder %v939_v6, 15 }
 0x3a9   :  { %787 = vmatpush1.msk.msra.mxu0 %vm1444_vm10, %v503_v28  ;;  %vm1453_vm10 = vmmov %vm1452_vm15  ;;  %v736_v28 = vld [vmem:[%s1399_s7] sm:$0xff] }
 0x3aa   :  { %596 = vmatprep.subr.mxu0 %v1132_v43 }
 0x3ab   :  { %v478_v29 = vpop.permute.xlu1 %477  ;;  %597 = vmatpush1.msra.mxu0 %v1130_v42  ;;  %v484_v31 = vpop.permute.xlu0 %483 }
 0x3ac   :  { %v487_v32 = vsel %vm1445_vm4, %v478_v29, %v480_v27  ;;  %v488_v33 = vsel %vm1446_vm3, %v484_v31, %v478_v29  ;;  %vm1454_vm4 = vmmov %vm1446_vm3 }
 0x3ad   :  { %788 = vmatprep.subr.msk.mxu0 %vm1447_vm5, %v487_v32  ;;  %vm1455_vm5 = vcmp.lt.s32.totalorder %v939_v6, 16  ;;  %v740_v32 = vld [vmem:[%s1400_s8] sm:$0xff] }
 0x3ae   :  { %789 = vmatpush1.msk.msra.mxu0 %vm1448_vm12, %v488_v33  ;;  %vm431_vm12 = vcmp.ge.s32.totalorder %v1213_v60, 1 }
 0x3af   :  { %v500_v34 = vpop.permute.xlu1 %499  ;;  %v460_v36 = vpop.permute.xlu0 %459 }
 0x3b0   :  { %v501_v38 = vsel %vm1449_vm14, %v498_v37, %v500_v34  ;;  %v504_v39 = vsel %vm1441_vm13, %v500_v34, %v494_v25  ;;  %vm1456_vm14 = vcmp.ge.s32.totalorder %v947_v12, 1 }
 0x3b1   :  { %803 = vmatprep.subr.msk.mxu1 %vm1450_vm8, %v504_v39 }
 0x3b2   :  { %804 = vmatpush1.msk.msra.mxu1 %vm1451_vm11, %v501_v38 }
 0x3b3   :  { %v458_v40 = vpop.permute.xlu1 %457  ;;  %667 = vmatprep.subr.mxu1 %v1148_v47  ;;  %v442_v13 = vpop.permute.xlu0 %441 }
 0x3b4   :  { %v467_v11 = vsel %vm1452_vm15, %v458_v40, %v460_v36  ;;  %668 = vmatpush1.msra.mxu1 %v1138_v44  ;;  %vm1459_vm15 = vmmov %vm1455_vm5 }
 0x3b5   :  { %790 = vmatprep.subr.msk.mxu0 %vm1070_vm6, %v467_v11  ;;  %vm432_vm6 = vcmp.ge.s32.totalorder %v1207_v57, 1 }
 0x3b7   :  { %v464_v41 = vpop.permute.xlu1 %463  ;;  %v482_v42 = vpop.permute.xlu0 %481 }
 0x3b8   :  { %v468_v43 = vsel %vm1453_vm10, %v464_v41, %v458_v40  ;;  %v485_v45 = vsel %vm1454_vm4, %v482_v42, %v484_v31  ;;  %v486_v46 = vsel %vm1446_vm3, %v480_v27, %v482_v42  ;;  %vm1460_vm4 = vmmov %vm1453_vm10  ;;  %vm1461_vm3 = vcmp.ge.s32.totalorder %v943_v10, 1 }
 0x3b9   :  { %791 = vmatpush1.msk.msra.mxu0 %vm1062_vm2, %v468_v43  ;;  %805 = vmatprep.subr.msk.mxu1 %vm434_vm9, %v485_v45  ;;  %vm1457_vm2 = vmmov %vm1450_vm8 }
 0x3ba   :  { %806 = vmatpush1.msk.msra.mxu1 %vm433_vm7, %v486_v46  ;;  %vm472_vm13 = vmand %vm432_vm6, %vm1457_vm2 }
 0x3bb   :  { %v444_v9 = vpop.permute.xlu1 %443  ;;  %v420_v44 = vpop.permute.xlu0 %419  ;;  %vm1458_vm8 = vmmov %vm1451_vm11 }
 0x3bc   :  { %v451_v47 = vsel %vm1455_vm5, %v442_v13, %v444_v9  ;;  %vm471_vm11 = vmand %vm431_vm12, %vm1458_vm8  ;;  %vm1462_vm5 = vcmp.lt.s32.totalorder %v939_v6, 17 }
 0x3bd   :  { %792 = vmatprep.subr.msk.mxu0 %vm1456_vm14, %v451_v47  ;;  %vm1463_vm14 = vmmov %vm1459_vm15 }
 0x3be   :  { %vm1464_vm2 = vmmov %vm1463_vm14 }
 0x3bf   :  { %v448_v8 = vpop.permute.xlu1 %447  ;;  %v462_v48 = vpop.permute.xlu0 %461  ;;  %vm1465_vm8 = vmmov %vm1462_vm5 }
 0x3c0   :  { %v452_v49 = vsel %vm1459_vm15, %v448_v8, %v442_v13  ;;  %v465_v50 = vsel %vm1453_vm10, %v462_v48, %v464_v41  ;;  %v466_v12 = vsel %vm1460_vm4, %v460_v36, %v462_v48  ;;  %vm1466_vm15 = vmmov %vm1462_vm5 }
 0x3c1   :  { %793 = vmatpush1.msk.msra.mxu0 %vm1461_vm3, %v452_v49  ;;  %807 = vmatprep.subr.msk.mxu1 %vm472_vm13, %v465_v50  ;;  %vm570_vm13 = vcmask 588800   ;;  %vm1467_vm10 = vmmov %vm1462_vm5 }
 0x3c2   :  { %808 = vmatpush1.msk.msra.mxu1 %vm471_vm11, %v466_v12  ;;  %vm435_vm11 = vmand %vm431_vm12, %vm433_vm7 }
 0x3c3   :  { %v422_v51 = vpop.permute.xlu1 %421  ;;  %v446_v52 = vpop.permute.xlu0 %445 }
 0x3c4   :  { %v429_v53 = vsel %vm1462_vm5, %v420_v44, %v422_v51  ;;  %v449_v54 = vsel %vm1463_vm14, %v446_v52, %v448_v8  ;;  %v450_v55 = vsel %vm1464_vm2, %v444_v9, %v446_v52 }
 0x3c5   :  { %794 = vmatprep.subr.msk.mxu0 %vm1100_vm0, %v429_v53  ;;  %809 = vmatprep.subr.msk.mxu1 %vm432_vm6, %v449_v54  ;;  %vm436_vm0 = vmand %vm432_vm6, %vm434_vm9 }
 0x3c6   :  { %810 = vmatpush1.msk.msra.mxu1 %vm431_vm12, %v450_v55 }
 0x3c7   :  { %v426_v10 = vpop.permute.xlu1 %425 }
 0x3c8   :  { %v430_v59 = vsel %vm1465_vm8, %v426_v10, %v420_v44 }
 0x3c9   :  { %795 = vmatpush1.msk.msra.mxu0 %vm1091_vm1, %v430_v59 }
 0x3ca   :  { %796 = vmatmul.mubr.msk.f32.vlgmr.msra.gmra.mxu0 %vm570_vm13, %v563_v56 }
 0x3cb   :  { %v424_v30 = vpop.permute.xlu1 %423 }
 0x3cc   :  { %v427_v62 = vsel %vm1466_vm15, %v424_v30, %v426_v10  ;;  %v428_v63 = vsel %vm1467_vm10, %v422_v51, %v424_v30 }
 0x3cd   :  { %811 = vmatprep.subr.msk.mxu1 %vm436_vm0, %v427_v62 }
 0x3ce   :  { %812 = vmatpush1.msk.msra.mxu1 %vm435_vm11, %v428_v63 }
 0x3cf   :  { %813 = vmatmul.mubr.msk.f32.vlgmr.msra.gmra.mxu1 %vm570_vm13, %v563_v56 }
 0x3d0   :  { %v568_v58 = vpop.permute.xlu0 %567 }
 0x48a   :  { %v640_v26 = vpop.f32.mrf.mxu0 }
 0x48b   :  { %v641_v57 = vadd.f32 %v640_v26, %v568_v58 }
 0x48c   :  { %v642_v1 = vpop.f32.mrf.mxu0 }
 0x48d   :  { %v643_v3 = vadd.f32 %v642_v1, %v568_v58 }
 0x48f   :  { %v716_v16 = vadd.f32 %v643_v3, %v641_v57  ;;  %v711_v17 = vpop.f32.mrf.mxu1 }
 0x490   :  { %v712_v61 = vadd.f32 %v711_v17, %v568_v58 }
 0x491   :  { %v713_v4 = vpop.f32.mrf.mxu1 }
 0x492   :  { %v714_v60 = vadd.f32 %v713_v4, %v568_v58  ;;  %v717_v5 = vadd.f32 %v716_v16, %v712_v61 }
 0x494   :  { %v718_v0 = vadd.f32 %v717_v5, %v714_v60 }
 0x496   :  { %719 = vadd.xlane.f32.xlu1 %v718_v0 }
 0x51f   :  { %v720_v2 = vpop.xlane.xlu1 %719 }
 0x520   :  { %v721_v7 = vmul.f32 0.001953125, %v720_v2 }
 0x522   :  { %v722_v6 = vsub.f32 %v641_v57, %v721_v7  ;;  %v723_v14 = vsub.f32 %v643_v3, %v721_v7  ;;  %v724_v15 = vsub.f32 %v712_v61, %v721_v7  ;;  %v725_v18 = vsub.f32 %v714_v60, %v721_v7 }
 0x524   :  { %v726_v19 = vmul.f32 %v722_v6, %v722_v6  ;;  %v727_v20 = vmul.f32 %v723_v14, %v723_v14  ;;  %v728_v21 = vmul.f32 %v724_v15, %v724_v15  ;;  %v729_v22 = vmul.f32 %v725_v18, %v725_v18 }
 0x526   :  { %v730_v37 = vadd.f32 %v727_v20, %v726_v19 }
 0x528   :  { %v731_v35 = vadd.f32 %v730_v37, %v728_v21 }
 0x52a   :  { %v732_v23 = vadd.f32 %v731_v35, %v729_v22 }
 0x52c   :  { %733 = vadd.xlane.f32.xlu0 %v732_v23 }
 0x5b5   :  { %v734_v24 = vpop.xlane.xlu0 %733 }
 0x5b6   :  { %v735_v25 = vmul.f32 0.001953125, %v734_v24 }
 0x5b8   :  { %v737_v27 = vadd.f32 1e-05, %v735_v25 }
 0x5ba   :  { %830 = vrsqrt.f32 %v737_v27 }
 0x5c7   :  { %v831_v29 = vpop.eup %830 }
 0x5c8   :  { %v739_v31 = vmul.f32 %v831_v29, %v736_v28 }
 0x5ca   :  { %745 = vperm.xlu0 %826, %v739_v31   ;;  %v741_v33 = vmul.f32 %v739_v31, %v721_v7 }
 0x5cc   :  { %v742_v34 = vsub.f32 %v740_v32, %v741_v33 }
 0x5ce   :  { %754 = vperm.xlu1 %827, %v742_v34  }
 0x645   :  { %v746_v36 = vpop.permute.xlu0 %745 }
 0x646   :  { %v748_v38 = vmul.f32 %v746_v36, %v641_v57  ;;  %v749_v39 = vmul.f32 %v746_v36, %v643_v3  ;;  %v750_v40 = vmul.f32 %v746_v36, %v712_v61  ;;  %v751_v13 = vmul.f32 %v746_v36, %v714_v60 }
 0x649   :  { %v755_v11 = vpop.permute.xlu1 %754 }
 0x64a   :  { %v757_v41 = vadd.f32 %v755_v11, %v748_v38  ;;  %v758_v42 = vadd.f32 %v755_v11, %v749_v39  ;;  %v759_v43 = vadd.f32 %v755_v11, %v750_v40  ;;  %v760_v45 = vadd.f32 %v755_v11, %v751_v13 }
 0x64c   :  { %v761_v46 = vmax.f32 %v757_v41, 0.0  ;;  %v762_v9 = vmax.f32 %v758_v42, 0.0  ;;  %v763_v44 = vmax.f32 %v759_v43, 0.0  ;;  %v764_v47 = vmax.f32 %v760_v45, 0.0 }
 0x64e   :  { %765 = vst [vmem:[%s1401_s9] sm:$0xff] %v761_v46  ;;  %766 = vst [vmem:[%s1401_s9 + $0x8] sm:$0xff] %v762_v9 }
 0x64f   :  { %814 = vst [vmem:[%s1401_s9 + $0x10] sm:$0xff] %v763_v44  ;;  %815 = vst [vmem:[%s1401_s9 + $0x18] sm:$0xff] %v764_v47 }

</bundles_post_ra>
